<compile_context>
chip_gen: v5e
topology: v5e:2x2
jax: 0.10.0
libtpu: 0.0.40
codegen_flags: <defaults>
</compile_context>

<pallas_src>
import functools
import math

import jax
import jax.numpy as jnp
import numpy as np
from jax.experimental import pallas as pl
from jax.experimental.pallas import tpu as pltpu


def _device_vmem_cap_bytes():
    """Physical VMEM per TensorCore; conservative fallback if query fails."""
    try:
        return int(pltpu.get_tpu_info().vmem_capacity_bytes)
    except Exception:
        return 64 << 20  # v7x-sized conservative default


def _qkv_proj_kernel(x_ref, w_ref, b_ref, q_ref, k_ref, v_ref, *, scale):
    """One (batch, row-tile) step of the fused c_attn projection."""
    x = x_ref[0]                                   # (tr, C), input dtype
    w = w_ref[...]                                 # (C, 3C)
    b = b_ref[...]                                 # (1, 3C)
    qkv = jnp.dot(x, w, preferred_element_type=jnp.float32)
    qkv = qkv + b.astype(jnp.float32)              # bias added once per tile
    C = q_ref.shape[-1]
    # Fold the softmax scale into Q here (f32, before the down-cast) so the
    # flash kernel never multiplies (tq, tk) score tiles by the scale.
    q_ref[0] = (qkv[:, 0 * C:1 * C] * scale).astype(q_ref.dtype)
    k_ref[0] = qkv[:, 1 * C:2 * C].astype(k_ref.dtype)
    v_ref[0] = qkv[:, 2 * C:3 * C].astype(v_ref.dtype)


def _flash_attn_kernel(q_ref, k_ref, v_ref, wp_ref, bp_ref, o_ref,
                       acc_ref, m_ref, l_ref, *, n_head, tq, tk):
    qi = pl.program_id(1)
    ki = pl.program_id(2)
    nk = pl.num_programs(2)

    C = q_ref.shape[-1]
    hd = C // n_head
    use_approx_recip = bool(jnp.dtype(o_ref.dtype) != jnp.float32)

    q_start = qi * tq
    kv_start = ki * tk

    @pl.when(ki == 0)
    def _init():
        m_ref[...] = jnp.full(m_ref.shape, -jnp.inf, dtype=m_ref.dtype)
        l_ref[...] = jnp.zeros(l_ref.shape, dtype=l_ref.dtype)
        acc_ref[...] = jnp.zeros(acc_ref.shape, dtype=acc_ref.dtype)

    # Causal tile classification:
    #   active   : first key index <= last query index   (tile contributes)
    #   diagonal : last key index  >  first query index   (partially masked)
    # Interior (fully unmasked) tiles skip both the mask construction and the
    # per-head (tq, tk) bias add.
    is_active = kv_start <= q_start + (tq - 1)
    needs_mask = kv_start + (tk - 1) > q_start

    def _step(masked):
        q = q_ref[0]                               # (tq, C)  (already scaled)
        k = k_ref[0]                               # (tk, C)
        v = v_ref[0]                               # (tk, C)

        if masked:
            row = q_start + jax.lax.broadcasted_iota(jnp.int32, (tq, tk), 0)
            col = kv_start + jax.lax.broadcasted_iota(jnp.int32, (tq, tk), 1)
            mask_bias = jnp.where(col <= row, 0.0, -jnp.inf).astype(jnp.float32)

        alpha_parts = []
        pv_parts = []
        for h in range(n_head):                    # static unroll; lane-contiguous slices
            sl = slice(h * hd, (h + 1) * hd)
            q_h = q[:, sl]                         # (tq, hd)
            k_h = k[:, sl]                         # (tk, hd)
            v_h = v[:, sl]                         # (tk, hd)

            s = jax.lax.dot_general(               # (tq, tk), f32 accumulation on MXU
                q_h, k_h, (((1,), (1,)), ((), ())),
                preferred_element_type=jnp.float32)
            if masked:
                s = s + mask_bias

            m_prev = m_ref[h]                      # (tq, 1) f32
            l_prev = l_ref[h]
            m_new = jnp.maximum(m_prev, jnp.max(s, axis=-1, keepdims=True))
            alpha = jnp.exp(m_prev - m_new)        # (tq, 1)
            p = jnp.exp(s - m_new)                 # (tq, tk) f32
            m_ref[h] = m_new
            l_ref[h] = alpha * l_prev + jnp.sum(p, axis=-1, keepdims=True)

            pv_parts.append(jnp.dot(p.astype(v_h.dtype), v_h,
                                    preferred_element_type=jnp.float32))  # (tq, hd) f32
            alpha_parts.append(jnp.broadcast_to(alpha, (tq, hd)))

        # Single lane-dense FMA over (tq, C): no per-head sub-128-lane RMWs.
        alpha_full = jnp.concatenate(alpha_parts, axis=-1)   # (tq, C) f32
        pv_full = jnp.concatenate(pv_parts, axis=-1)         # (tq, C) f32
        acc_ref[...] = alpha_full * acc_ref[...] + pv_full

    @pl.when(jnp.logical_and(is_active, needs_mask))
    def _step_diagonal():
        _step(masked=True)

    @pl.when(jnp.logical_and(is_active, jnp.logical_not(needs_mask)))
    def _step_interior():
        _step(masked=False)

    @pl.when(ki == nk - 1)
    def _finalize():
        # Full-width 1/l normalization (lane-dense), then c_proj.
        # Correctness note: ki == 0 is always processed first, so m/l are
        # finite for every row even when a diagonal tile has fully-masked rows.
        inv_parts = [
            jnp.broadcast_to(pl.reciprocal(l_ref[h], approx=use_approx_recip), (tq, hd))
            for h in range(n_head)
        ]
        inv_full = jnp.concatenate(inv_parts, axis=-1)        # (tq, C) f32
        y = (acc_ref[...] * inv_full).astype(o_ref.dtype)     # (tq, C)
        out = jnp.dot(y, wp_ref[...], preferred_element_type=jnp.float32)
        out = out + bp_ref[...].astype(jnp.float32)
        o_ref[0] = out.astype(o_ref.dtype)


def self_attention(x, w_attn, b_attn, w_proj, b_proj, *, n_head,
                   q_tile=None, kv_tile=None):
    """Causal self-attention forward pass (eval mode).

    x: (B, T, C)   w_attn: (C, 3C)  b_attn: (3C,)  w_proj: (C, C)  b_proj: (C,)
    """
    B, T, C = x.shape
    three_c = w_attn.shape[1]
    assert three_c == 3 * C
    assert C % n_head == 0
    hd = C // n_head
    dtype = x.dtype
    itemsize = jnp.dtype(dtype).itemsize
    scale = 1.0 / math.sqrt(hd)

    # Physical VMEM budget (v5e/v6e: 128 MiB, v7x: 64 MiB per core).
    vmem_cap = _device_vmem_cap_bytes()
    vmem_budget = max(vmem_cap - (8 << 20), 8 << 20)
    big_vmem = vmem_cap >= (96 << 20)

    # Minimum sublane tile per dtype: f32 -> 8, bf16 -> 16, int8/fp8 -> 32.
    min_sub = {4: 8, 2: 16, 1: 32}.get(itemsize, 8)

    def _pick(tile, cap):
        if tile is None:
            if T <= cap:
                tile = T
            else:
                tile = T
                for cand in range(cap, min_sub - 1, -min_sub):
                    if T % cand == 0:
                        tile = cand
                        break
        assert T % tile == 0, "sequence length must be divisible by the tile size"
        assert tile == T or tile % min_sub == 0, (
            f"tiles must be a multiple of {min_sub} sublanes for dtype {dtype} "
            f"(or equal to the full sequence length)")
        return tile

    # q tile: 256 by default (128 would only matter for very large C on v7x).
    # kv tile: 512 on big-VMEM parts (fewer grid steps, longer MXU N), else 256.
    tq = _pick(q_tile, 256)
    tk = _pick(kv_tile, 512 if big_vmem else 256)
    tr = tq                                        # row tile for the qkv projection

    b_attn2 = b_attn.reshape(1, three_c)
    b_proj2 = b_proj.reshape(1, C)

    # ---------------- kernel 1: fused c_attn (QKV) projection ----------------
    nr = T // tr
    flops_a = 2 * B * T * C * three_c
    bytes_a = itemsize * (4 * B * T * C + C * three_c + three_c)
    need_a = (2 * itemsize * (tr * C + C * three_c + three_c + 3 * tr * C)
              + 4 * tr * three_c + (2 << 20))
    vmem_a = int(min(vmem_budget, max(need_a, 8 << 20)))
    qkv_kernel = functools.partial(_qkv_proj_kernel, scale=scale)
    q, k, v = pl.pallas_call(
        qkv_kernel,
        out_shape=tuple(jax.ShapeDtypeStruct((B, T, C), dtype) for _ in range(3)),
        grid_spec=pltpu.PrefetchScalarGridSpec(
            num_scalar_prefetch=0,
            grid=(B, nr),
            in_specs=[
                pl.BlockSpec((1, tr, C), lambda b, r: (b, r, 0)),
                pl.BlockSpec((C, three_c), lambda b, r: (0, 0)),
                pl.BlockSpec((1, three_c), lambda b, r: (0, 0)),
            ],
            out_specs=(
                pl.BlockSpec((1, tr, C), lambda b, r: (b, r, 0)),
                pl.BlockSpec((1, tr, C), lambda b, r: (b, r, 0)),
                pl.BlockSpec((1, tr, C), lambda b, r: (b, r, 0)),
            ),
        ),
        compiler_params=pltpu.CompilerParams(
            dimension_semantics=("parallel", "parallel"),
            vmem_limit_bytes=vmem_a),
        cost_estimate=pl.CostEstimate(flops=flops_a, transcendentals=0,
                                      bytes_accessed=bytes_a),
    )(x, w_attn, b_attn2)

    # ---------------- kernel 2: flash attention + c_proj ---------------------
    nq, nk = T // tq, T // tk
    kernel = functools.partial(_flash_attn_kernel, n_head=n_head, tq=tq, tk=tk)
    # flops: causal halves the T^2 terms (QK^T + PV), plus the c_proj matmul.
    flops_b = 2 * B * T * T * C + 2 * B * T * C * C
    transc_b = (B * n_head * T * T) // 2
    # Clamped K/V index_map means K/V are re-read roughly (nq+1)/2 times each.
    bytes_b = itemsize * (2 * B * T * C + 2 * B * T * C * (nq + 1) // 2
                          + C * C + C)
    need_b = (2 * itemsize * (2 * tq * C + 2 * tk * C + C * C + C)
              + 4 * (tq * C + 2 * n_head * tq * 8)          # acc + m/l (padded)
              + 4 * (2 * tq * tk + 2 * tq * C)              # s/p + alpha/pv temps
              + (2 << 20))
    vmem_b = int(min(vmem_budget, max(need_b, 8 << 20)))

    # Clamp the K/V block index to the last causally-active kv block so the
    # pipeline does not stream tiles that pl.when will skip anyway.
    def _kv_index(b, qi, ki):
        last_active = (qi * tq + tq - 1) // tk
        return (b, jnp.minimum(ki, last_active), 0)

    out = pl.pallas_call(
        kernel,
        out_shape=jax.ShapeDtypeStruct((B, T, C), dtype),
        grid_spec=pltpu.PrefetchScalarGridSpec(
            num_scalar_prefetch=0,
            grid=(B, nq, nk),
            in_specs=[
                pl.BlockSpec((1, tq, C), lambda b, qi, ki: (b, qi, 0)),   # q (pre-scaled)
                pl.BlockSpec((1, tk, C), _kv_index),                      # k
                pl.BlockSpec((1, tk, C), _kv_index),                      # v
                pl.BlockSpec((C, C), lambda b, qi, ki: (0, 0)),           # w_proj
                pl.BlockSpec((1, C), lambda b, qi, ki: (0, 0)),           # b_proj
            ],
            out_specs=pl.BlockSpec((1, tq, C), lambda b, qi, ki: (b, qi, 0)),
            scratch_shapes=[
                pltpu.VMEM((tq, C), jnp.float32),           # acc (heads lane-packed)
                pltpu.VMEM((n_head, tq, 1), jnp.float32),   # running max m
                pltpu.VMEM((n_head, tq, 1), jnp.float32),   # running sum l
            ],
        ),
        compiler_params=pltpu.CompilerParams(
            dimension_semantics=("parallel", "parallel", "arbitrary"),
            vmem_limit_bytes=vmem_b),
        cost_estimate=pl.CostEstimate(flops=flops_b, transcendentals=transc_b,
                                      bytes_accessed=bytes_b),
    )(q, k, v, w_proj, b_proj2)
    # TODO(synk): attn_dropout / resid_dropout are identity in eval mode; training-time
    # dropout, LoRA c_attn, and the 'prefix' (flex_attention) branch are not implemented.
    return out


def self_attention_ref(x, w_attn, b_attn, w_proj, b_proj, *, n_head):
    """Pure-JAX reference mirroring the PyTorch forward (eval mode)."""
    B, T, C = x.shape
    hd = C // n_head
    qkv = x @ w_attn + b_attn                                # (B, T, 3C)
    q, k, v = jnp.split(qkv, 3, axis=-1)
    def to_heads(t):
        return t.reshape(B, T, n_head, hd).transpose(0, 2, 1, 3)   # (B, H, T, hd)
    q, k, v = to_heads(q), to_heads(k), to_heads(v)
    att = (q @ jnp.swapaxes(k, -2, -1)) / math.sqrt(hd)       # (B, H, T, T)
    mask = jnp.tril(jnp.ones((T, T), dtype=bool))
    att = jnp.where(mask[None, None], att, -jnp.inf)
    att = jax.nn.softmax(att, axis=-1)
    y = att @ v                                               # (B, H, T, hd)
    y = y.transpose(0, 2, 1, 3).reshape(B, T, C)
    return y @ w_proj + b_proj


if __name__ == "__main__":
    # Small config consistent with the module (n_embd % n_head == 0); T=32 with
    # small tiles exercises multi-tile online softmax, diagonal/interior tile
    # paths, causal tile skipping, and the clamped K/V index_map.
    B, T = 2, 32
    n_embd, n_head = 32, 4

    key = jax.random.PRNGKey(0)
    kx, k1, k2, k3, k4 = jax.random.split(key, 5)

    x = jax.random.normal(kx, (B, T, n_embd), dtype=jnp.float32)

    bound = 1.0 / math.sqrt(n_embd)
    w_attn = jax.random.uniform(k1, (n_embd, 3 * n_embd), jnp.float32, -bound, bound)
    b_attn = jax.random.uniform(k2, (3 * n_embd,), jnp.float32, -bound, bound)
    w_proj = jax.random.uniform(k3, (n_embd, n_embd), jnp.float32, -bound, bound)
    b_proj = jax.random.uniform(k4, (n_embd,), jnp.float32, -bound, bound)

    ref = self_attention_ref(x, w_attn, b_attn, w_proj, b_proj, n_head=n_head)

    # f32 path, multi-tile: tight check against the pure-JAX reference.
    out = self_attention(x, w_attn, b_attn, w_proj, b_proj, n_head=n_head,
                         q_tile=8, kv_tile=8)
    out = jax.block_until_ready(out)
    np.testing.assert_allclose(np.asarray(out), np.asarray(ref),
                               rtol=5e-4, atol=5e-5)

    # f32 path, default (full-T) tiles: covers the nq = nk = 1 finalize path.
    out_full = self_attention(x, w_attn, b_attn, w_proj, b_proj, n_head=n_head)
    out_full = jax.block_until_ready(out_full)
    np.testing.assert_allclose(np.asarray(out_full), np.asarray(ref),
                               rtol=5e-4, atol=5e-5)

    # bf16 path (bf16 MXU inputs, f32 accumulation): loose check vs f32 reference.
    # bf16 requires >=16-row tiles (two rows pack per sublane).
    bf = jnp.bfloat16
    out_bf16 = self_attention(x.astype(bf), w_attn.astype(bf), b_attn.astype(bf),
                              w_proj.astype(bf), b_proj.astype(bf),
                              n_head=n_head, q_tile=16, kv_tile=16)
    out_bf16 = jax.block_until_ready(out_bf16)
    np.testing.assert_allclose(np.asarray(out_bf16.astype(jnp.float32)),
                               np.asarray(ref), rtol=1e-1, atol=1e-1)

    print("KERNEL_OK")
</pallas_src>

<mosaic_0001>
module attributes {stable_mosaic.version = 11 : i64} {
  func.func @_qkv_proj_kernel(%arg0: i32, %arg1: i32, %arg2: memref<1x8x32xf32, #tpu.memory_space<vmem>>, %arg3: memref<32x96xf32, #tpu.memory_space<vmem>>, %arg4: memref<1x96xf32, #tpu.memory_space<vmem>>, %arg5: memref<1x8x32xf32, #tpu.memory_space<vmem>>, %arg6: memref<1x8x32xf32, #tpu.memory_space<vmem>>, %arg7: memref<1x8x32xf32, #tpu.memory_space<vmem>>) attributes {dimension_semantics = [#tpu.dimension_semantics<parallel>, #tpu.dimension_semantics<parallel>], iteration_bounds = array<i64: 2, 4>, scalar_prefetch = 0 : i64, scratch_operands = 0 : i64, tpu.core_type = #tpu.core_type<tc>, window_params = [{transform_indices = @transform_0, window_bounds = array<i64: 1, 8, 32>}, {pipeline_mode = #tpu.pipeline_mode<synchronous>, transform_indices = @transform_1, window_bounds = array<i64: 32, 96>}, {pipeline_mode = #tpu.pipeline_mode<synchronous>, transform_indices = @transform_2, window_bounds = array<i64: 1, 96>}, {transform_indices = @transform_3, window_bounds = array<i64: 1, 8, 32>}, {transform_indices = @transform_4, window_bounds = array<i64: 1, 8, 32>}, {transform_indices = @transform_5, window_bounds = array<i64: 1, 8, 32>}]} {
    %c0 = arith.constant 0 : index
    %c0_0 = arith.constant 0 : index
    %c0_1 = arith.constant 0 : index
    %0 = vector.load %arg2[%c0, %c0_0, %c0_1] : memref<1x8x32xf32, #tpu.memory_space<vmem>>, vector<1x8x32xf32>
    %1 = vector.shape_cast %0 : vector<1x8x32xf32> to vector<8x32xf32>
    %c0_2 = arith.constant 0 : index
    %c0_3 = arith.constant 0 : index
    %2 = vector.load %arg3[%c0_2, %c0_3] : memref<32x96xf32, #tpu.memory_space<vmem>>, vector<32x96xf32>
    %c0_4 = arith.constant 0 : index
    %c0_5 = arith.constant 0 : index
    %3 = vector.load %arg4[%c0_4, %c0_5] : memref<1x96xf32, #tpu.memory_space<vmem>>, vector<1x96xf32>
    %cst = arith.constant dense<0.000000e+00> : vector<8x96xf32>
    %4 = tpu.matmul %1, %2, %cst {dimension_numbers = #tpu.dot_dimension_numbers<[1], [0], [0], [1], [0, 0, 1, 1], [], []>} : vector<8x32xf32>, vector<32x96xf32>, vector<8x96xf32> -> vector<8x96xf32>
    %5 = vector.broadcast %3 : vector<1x96xf32> to vector<8x96xf32>
    %6 = arith.addf %4, %5 : vector<8x96xf32>
    %7 = vector.extract_strided_slice %6 {offsets = [0, 0], sizes = [8, 32], strides = [1, 1]} : vector<8x96xf32> to vector<8x32xf32>
    %cst_6 = arith.constant 0.353553385 : f32
    %8 = vector.broadcast %cst_6 : f32 to vector<8x32xf32>
    %9 = arith.mulf %7, %8 : vector<8x32xf32>
    %c0_7 = arith.constant 0 : index
    %c0_8 = arith.constant 0 : index
    %c0_9 = arith.constant 0 : index
    %10 = vector.load %arg5[%c0_7, %c0_8, %c0_9] : memref<1x8x32xf32, #tpu.memory_space<vmem>>, vector<1x8x32xf32>
    %11 = vector.shape_cast %10 : vector<1x8x32xf32> to vector<8x32xf32>
    %12 = vector.shape_cast %9 : vector<8x32xf32> to vector<1x8x32xf32>
    tpu.vector_store %arg5[%c0_7, %c0_8, %c0_9], %12 {strides = array<i32>} : memref<1x8x32xf32, #tpu.memory_space<vmem>>, vector<1x8x32xf32>,
    %13 = vector.extract_strided_slice %6 {offsets = [0, 32], sizes = [8, 32], strides = [1, 1]} : vector<8x96xf32> to vector<8x32xf32>
    %c0_10 = arith.constant 0 : index
    %c0_11 = arith.constant 0 : index
    %c0_12 = arith.constant 0 : index
    %14 = vector.load %arg6[%c0_10, %c0_11, %c0_12] : memref<1x8x32xf32, #tpu.memory_space<vmem>>, vector<1x8x32xf32>
    %15 = vector.shape_cast %14 : vector<1x8x32xf32> to vector<8x32xf32>
    %16 = vector.shape_cast %13 : vector<8x32xf32> to vector<1x8x32xf32>
    tpu.vector_store %arg6[%c0_10, %c0_11, %c0_12], %16 {strides = array<i32>} : memref<1x8x32xf32, #tpu.memory_space<vmem>>, vector<1x8x32xf32>,
    %17 = vector.extract_strided_slice %6 {offsets = [0, 64], sizes = [8, 32], strides = [1, 1]} : vector<8x96xf32> to vector<8x32xf32>
    %c0_13 = arith.constant 0 : index
    %c0_14 = arith.constant 0 : index
    %c0_15 = arith.constant 0 : index
    %18 = vector.load %arg7[%c0_13, %c0_14, %c0_15] : memref<1x8x32xf32, #tpu.memory_space<vmem>>, vector<1x8x32xf32>
    %19 = vector.shape_cast %18 : vector<1x8x32xf32> to vector<8x32xf32>
    %20 = vector.shape_cast %17 : vector<8x32xf32> to vector<1x8x32xf32>
    tpu.vector_store %arg7[%c0_13, %c0_14, %c0_15], %20 {strides = array<i32>} : memref<1x8x32xf32, #tpu.memory_space<vmem>>, vector<1x8x32xf32>,
    return
  }
  func.func @transform_0(%arg0: i32, %arg1: i32) -> (i32, i32, i32) {
    %c0_i32 = arith.constant 0 : i32
    %c0_i32_0 = arith.constant 0 : i32
    return %arg0, %arg1, %c0_i32 : i32, i32, i32
  }
  func.func @transform_1(%arg0: i32, %arg1: i32) -> (i32, i32) {
    %c0_i32 = arith.constant 0 : i32
    %c0_i32_0 = arith.constant 0 : i32
    %c0_i32_1 = arith.constant 0 : i32
    return %c0_i32, %c0_i32_0 : i32, i32
  }
  func.func @transform_2(%arg0: i32, %arg1: i32) -> (i32, i32) {
    %c0_i32 = arith.constant 0 : i32
    %c0_i32_0 = arith.constant 0 : i32
    %c0_i32_1 = arith.constant 0 : i32
    return %c0_i32, %c0_i32_0 : i32, i32
  }
  func.func @transform_3(%arg0: i32, %arg1: i32) -> (i32, i32, i32) {
    %c0_i32 = arith.constant 0 : i32
    %c0_i32_0 = arith.constant 0 : i32
    return %arg0, %arg1, %c0_i32 : i32, i32, i32
  }
  func.func @transform_4(%arg0: i32, %arg1: i32) -> (i32, i32, i32) {
    %c0_i32 = arith.constant 0 : i32
    %c0_i32_0 = arith.constant 0 : i32
    return %arg0, %arg1, %c0_i32 : i32, i32, i32
  }
  func.func @transform_5(%arg0: i32, %arg1: i32) -> (i32, i32, i32) {
    %c0_i32 = arith.constant 0 : i32
    %c0_i32_0 = arith.constant 0 : i32
    return %arg0, %arg1, %c0_i32 : i32, i32, i32
  }
}

</mosaic_0001>

<bundles_post_ra>
// kernel: tpu_custom_call.1
= control target key start
LH: loop header
LB: loop body
LE: loop exit
PB: predicated region body
PF: predicated region fallthrough
CT: control target
= control target key end

     0   :  { %s1172_s0 = inlined_call_operand.hbm [shape: f32[2,32,32], index: 0, kind: input, shape index: {}]   ;;  %s1173_s1 = inlined_call_operand.hbm [shape: f32[32,96], index: 1, kind: input, shape index: {}]   ;;  %s1174_s2 = inlined_call_operand.vmem [shape: f32[1,96], index: 2, kind: input, shape index: {}]   ;;  %s1175_s3 = inlined_call_operand.hbm [shape: f32[2,32,32], index: 3, kind: output, shape index: {0}]   ;;  %s1176_s4 = inlined_call_operand.hbm [shape: f32[2,32,32], index: 4, kind: output, shape index: {1}]   ;;  %s1177_s5 = inlined_call_operand.hbm [shape: f32[2,32,32], index: 5, kind: output, shape index: {2}]  }
   0x1   :  { %1185 = sst [smem:[#allocation19_spill]] %s1173_s1 }
   0x2   :  { %1186 = sst [smem:[#allocation20_spill]] %s1176_s4 }
   0x3   :  { %1187 = sst [smem:[#allocation21_spill]] %s1177_s5 }
   0x4   :  { %11 = vsyncpa [#allocation3], 0 }
   0x5   :  { %13 = vsyncpa [#allocation3 + $0x1], 0 }
   0x6   :  { %14 = vsyncpa [#allocation6], 0 }
   0x7   :  { %15 = vsyncpa [#allocation4], 0 }
   0x8   :  { %17 = vsyncpa [#allocation4 + $0x1], 0 }
   0x9   :  { %18 = vsyncpa [#allocation9], 0 }
   0xa   :  { %20 = vsyncpa [#allocation9 + $0x1], 0  ;;  %s954_s18 = smov 0   ;;  %s956_s19 = smov 0  }
   0xb   :  { %s958_s20 = smov 0   ;;  %s960_s21 = smov 0  }
   0xc   :  { %s962_s22 = smov 0   ;;  %s964_s23 = smov 0  }
   0xd   :  { %s966_s24 = smov 0   ;;  %s968_s25 = smov 0  }
   0xe LB: > { %1188 = sst [smem:[#allocation15_spill]] %s889_s18  ;;  %s995_s26 = sadd.s32 4294967295, %s917_s25   ;;  %s917_s25 = sphi %s968_s25, %s26_s25   ;;  %s913_s24 = sphi %s966_s24, %s1211_s24   ;;  %s909_s23 = sphi %s964_s23, %s1210_s23   ;;  %s905_s22 = sphi %s962_s22, %s1209_s22   ;;  %s901_s21 = sphi %s960_s21, %s1208_s21   ;;  %s897_s20 = sphi %s958_s20, %s1207_s20   ;;  %s893_s19 = sphi %s956_s19, %s1206_s19   ;;  %s889_s18 = sphi %s954_s18, %s1205_s18  }
   0xf   : > { %p567_p0 = scmp.ge.s32.totalorder %s917_s25, 1  ;;  %p61_p1 = scmp.eq.s32.totalorder %s995_s26, 0 }
  0x10   : > { %p197_p2 = scmp.lt.s32.totalorder %s917_s25, 9  ;;  %s1189_s1 = sld [smem:[#allocation19_spill]] }
  0x11   : > { %s919_s6 = smov [#allocation5]   ;;  %s920_s8 = smov 128  }
  0x12   : > { %p1003_p3 = pnand %p567_p0, %p197_p2  ;;  %s210_s7 = sshll.u32 %s919_s6, 4  ;;  %s211_s7 = int_to_ptr.vmem [resolvable:$true] %s210_s7 }
  0x13   : > { %s921_s9 = smov 8   ;;  %s1178_s10 = sadd.s32 4294967294, %s917_s25  }
  0x14   : > { %p603_p4 = pneg %p1003_p3  ;;  %s35_s11 = sadd.s32 1, %s909_s23 }
  0x15   : > { %s38_s12 = sadd.s32 1, %s913_s24  ;;  %p36_p6 = scmp.ge.s32.totalorder %s35_s11, 4 }
  0x16   : > { %s208_s29 = sshll.u32 %s1189_s1, 4  ;;  %p604_p5 = pnand %p603_p4, %p61_p1  ;;  %s209_s29 = int_to_ptr.hbm [resolvable:$true] %s208_s29 }
  0x17   : > { %s47_s13 = sadd.s32 1, %s897_s20  ;;  %p54_p7 = scmp.ne.s32.totalorder %s897_s20, %s893_s19 }
  0x18   : > { %606 = dma.hbm_to_vmem [thread:$0]  (!%p604_p5), %s209_s29, 512, %s211_s7, [#allocation6], %s920_s8, %s920_s8, %s921_s9  }
  0x19   : > { %p55_p8 = scmp.eq.s32.totalorder %s917_s25, 0  ;;  %s1213_s11 = smov (%p36_p6, %s35_s11), 0 }
  0x1a   : > { %1191 = sst [smem:[#allocation16_spill]] %s1213_s11  ;;  %s1215_s12 = smov (!%p36_p6, %s38_s12), %s913_s24 }
  0x1b   : > { %s43_s14 = ssub.s32 %s909_s23, %s1213_s11  ;;  %p1023_p9 = por %p55_p8, %p54_p7 }
  0x1c   : > { %p40_p10 = scmp.ge.s32.totalorder %s1215_s12, 2  ;;  %p60_p11 = scmp.ne.s32.totalorder %s893_s19, %s889_s18 }
  0x1d   : > { %p128_p12 = scmp.eq.s32.totalorder %s995_s26, 7  ;;  %p134_p13 = scmp.eq.s32.totalorder %s1178_s10, 7 }
  0x1e   : > { %s1217_s12 = smov (%p40_p10, %s1215_s12), 0  ;;  %p1036_p0 = por %p61_p1, %p60_p11 }
  0x1f   : > { %1193 = sst [smem:[#allocation17_spill]] %s1217_s12  ;;  %p1040_p2 = por %p128_p12, %p54_p7 }
  0x20   : > { %s42_s27 = ssub.s32 %s913_s24, %s1217_s12  ;;  %p1046_p4 = por %p134_p13, %p60_p11 }
  0x21   : > { %s44_s29 = sor.u32 %s43_s14, %s42_s27  ;;  %p622_p5 = scmp.lt.s32.totalorder %s917_s25, 8 }
  0x22   : > { %s1196_s28 = scalar_select %p1046_p4, 1, 0 }
  0x23   : > { %p45_p6 = scmp.eq.s32.totalorder %s44_s29, 0  ;;  %s227_s6 = sand.u32 1, %s897_s20  }
  0x24   : > { %1197 = sst [smem:[#allocation18_spill]] %s1196_s28  ;;  %s570_s7 = sshll.u32 %s227_s6, 3 }
  0x25   : > { %s1053_s8 = scalar_select %p45_p6, %s897_s20, %s47_s13  }
  0x26   : > { %s571_s9 = sshll.u32 %s913_s24, 2  ;;  %s231_s1 = scalar_lea.vmem [#allocation2], %s570_s7 }
  0x27   : > { %s235_s10 = sadd.s32 %s909_s23, %s571_s9  ;;  %s241_s11 = sshll.u32 %s231_s1, 4  ;;  %s242_s11 = int_to_ptr.vmem [resolvable:$true] %s241_s11 }
  0x28   : > { %s572_s18 = sshll.u32 %s235_s10, 3  ;;  %p608_p7 = pnand %p622_p5, %p1023_p9 }
  0x29   : > { %s237_s12 = scalar_lea.hbm %s1172_s0, %s572_s18  ;;  %s228_s14 = scalar_lea.sflag [#allocation3], %s227_s6 }
  0x2a   : > { %s239_s28 = sshll.u32 %s237_s12, 4  ;;  %250 = sbr.rel (%p1003_p3) target bundleno = 317 (0x13d), region = 32  ;;  %s240_s28 = int_to_ptr.hbm [resolvable:$true] %s239_s28 }
  0x2b   : > { %610 = dma.hbm_to_vmem [thread:$0]  (!%p608_p7), %s240_s28, 128, %s242_s11, %s228_s14  }
  0x2c   : > { %s1065_s13 = sand.u32 (!%p1003_p3), 1, %s893_s19  }
  0x2d   : > { %s1068_s1 = sshll.u32 (!%p1003_p3), %s1065_s13, 3  ;;  %s253_s4 = scalar_lea.sflag (!%p1003_p3), [#allocation3], %s1065_s13 }
  0x2e   : > { %s256_s5 = scalar_lea.vmem (!%p1003_p3), [#allocation2], %s1068_s1 }
  0x2f   : > { %872 = dma.done.wait (%p1036_p0), %s253_s4, 128  }
  0x30   : > { %874 = vsyncadd (%p1036_p0), %s253_s4, 4294967168 }
  0x31   : > { %876 = dma.done.wait (%p61_p1), [#allocation6], 512  }
  0x32   : > { %878 = vsyncadd (%p61_p1), [#allocation6], 4294966784  ;;  %v303_v0 = vld [vmem:[#allocation5 + $0x18] sm:$0xff]  ;;  %v302_v1 = vld [vmem:[#allocation5 + $0x10] sm:$0xff]  ;;  %vm308_vm0 = vcmask 261120   ;;  %s583_s18 = sshll.u32 %s905_s22, 2 }
  0x33   : > { %324 = vmatpush.msra.mxu0 %v303_v0  ;;  %v301_v2 = vld [vmem:[#allocation5 + $0x8] sm:$0xff]  ;;  %v300_v3 = vld [vmem:[#allocation5] sm:$0xff]  ;;  %v299_v4 = vld [vmem:[%s256_s5] sm:$0xff]  ;;  %s364_s30 = sadd.s32 %s901_s21, %s583_s18  ;;  %s284_s28 = scalar_lea.vmem [#allocation7], %s1068_s1 }
  0x34   : > { %s1083_s10 = sshll.u32 %s364_s30, 3  ;;  %v694_v5 = vld [vmem:[%s1174_s2] ss:$0 sm:$0xff]  ;;  %s368_s29 = sshll.u32 %s284_s28, 4  ;;  %s369_s29 = int_to_ptr.vmem [resolvable:$true] %s368_s29 }
  0x35   : > { %325 = vmatpush.msra.mxu0 %v302_v1  ;;  %s366_s27 = scalar_lea.hbm %s1175_s3, %s1083_s10  ;;  %s922_s22 = smov 96  }
  0x36   : > { %s370_s6 = sshll.u32 %s366_s27, 4  ;;  %s344_s21 = scalar_lea.sflag [#allocation4], %s1065_s13  ;;  %s371_s6 = int_to_ptr.hbm [resolvable:$true] %s370_s6 }
  0x37   : > { %326 = vmatpush.msra.mxu0 %v301_v2  ;;  %s769_s7 = sshra.s32 %s371_s6, 4  ;;  %s775_s5 = scalar_lea.hbm %s1175_s3, 64  ;;  %s770_s7 = int_to_ptr.hbm [resolvable:$true] %s769_s7 }
  0x38   : > { %s771_s9 = scalar_lea.hbm %s770_s7, 8  ;;  %p776_p9 = scmp.lt.s32.totalorder %s770_s7, %s1175_s3 }
  0x39   : > { %327 = vmatpush.msra.mxu0 %v300_v3  ;;  %p772_p1 = scmp.ne.s32.totalorder %s770_s7, %s771_s9  ;;  %p777_p10 = scmp.lt.s32.totalorder %s775_s5, %s771_s9 }
  0x3a   : > { %579 = vmatmul.msk.f32.vlgmr.msra.gmra.mxu0 %vm308_vm0, %v299_v4 }
  0x3b   : > { %p773_p3 = pnand %p772_p1, %p1040_p2  ;;  %p778_p11 = por %p777_p10, %p776_p9 }
  0x3d   : > { %p774_p8 = pneg %p773_p3 }
  0x3f   : > { %p779_p12 = pnand %p778_p11, %p774_p8 }
  0xb7   : > { %v329_v6 = vpop.f32.mrf.mxu0 }
  0xb8   : > { %v330_v7 = vadd.f32 %v694_v5, %v329_v6 }
  0xba   : > { %v332_v8 = vmul.f32 0.35355338, %v330_v7  ;;  %335 = vrot.lane.b32.xlu0 %v330_v7, %s922_s22 }
  0xbc   : > { %333 = vst.msk [vmem:[%s284_s28] sm:$0xff] %vm308_vm0, %v332_v8 }
  0xbd   : > { %782 = shalt.err (!%p779_p12)
}
  0xbe   : > { %597 = dma.vmem_to_hbm [thread:$0]  (%p1040_p2), %s369_s29, 128, %s371_s6, %s344_s21  }
  0xbf   : > { %s923_s13 = smov 64   ;;  %s1198_s15 = sld [smem:[#allocation20_spill]] }
  0xc0   : > { %s348_s27 = sand.u32 1, %s995_s26   ;;  %s291_s28 = scalar_lea.vmem [#allocation8], %s1068_s1 }
  0xc1   : > { %s384_s22 = sshll.u32 %s291_s28, 4  ;;  %s1199_s4 = sld [smem:[#allocation21_spill]]  ;;  %s385_s22 = int_to_ptr.vmem [resolvable:$true] %s384_s22 }
  0xc2   : > { %339 = vrot.lane.b32.xlu0 %v330_v7, %s923_s13  ;;  %s1116_s6 = scalar_lea.sflag [#allocation9], %s348_s27 }
  0xc5   : > { %s382_s16 = scalar_lea.hbm %s1198_s15, %s1083_s10  ;;  %s803_s30 = scalar_lea.hbm %s1198_s15, 64 }
  0xc6   : > { %s386_s7 = sshll.u32 %s382_s16, 4  ;;  %s387_s7 = int_to_ptr.hbm [resolvable:$true] %s386_s7 }
  0xc7   : > { %s398_s29 = scalar_lea.hbm %s1199_s4, %s1083_s10  ;;  %s797_s21 = sshra.s32 %s387_s7, 4  ;;  %s798_s21 = int_to_ptr.hbm [resolvable:$true] %s797_s21 }
  0xc8   : > { %s799_s5 = scalar_lea.hbm %s798_s21, 8  ;;  %p804_p6 = scmp.lt.s32.totalorder %s798_s21, %s1198_s15 }
  0xc9   : > { %p800_p13 = scmp.ne.s32.totalorder %s798_s21, %s799_s5  ;;  %p805_p7 = scmp.lt.s32.totalorder %s803_s30, %s799_s5 }
  0xcb   : > { %p801_p0 = pnand %p800_p13, %p1040_p2  ;;  %p806_p1 = por %p805_p7, %p804_p6 }
  0xcd   : > { %p802_p5 = pneg %p801_p0 }
  0xcf   : > { %p807_p3 = pnand %p806_p1, %p802_p5 }
 0x12c   : > { %v336_v9 = vpop.permute.xlu0 %335 }
 0x12d   : > { %338 = vst.msk [vmem:[%s291_s28] sm:$0xff] %vm308_vm0, %v336_v9 }
 0x12e   : > { %810 = shalt.err (!%p807_p3)
}
 0x12f   : > { %598 = dma.vmem_to_hbm [thread:$0]  (%p1040_p2), %s385_s22, 128, %s387_s7, %s1116_s6  }
 0x130   : > { %s298_s10 = scalar_lea.vmem [#allocation10], %s1068_s1  ;;  %s402_s16 = sshll.u32 %s398_s29, 4  ;;  %s403_s16 = int_to_ptr.hbm [resolvable:$true] %s402_s16 }
 0x131   : > { %s400_s12 = sshll.u32 %s298_s10, 4  ;;  %s825_s27 = sshra.s32 %s403_s16, 4  ;;  %s401_s12 = int_to_ptr.vmem [resolvable:$true] %s400_s12  ;;  %s826_s27 = int_to_ptr.hbm [resolvable:$true] %s825_s27 }
 0x132   : > { %s827_s28 = scalar_lea.hbm %s826_s27, 8  ;;  %s831_s21 = scalar_lea.hbm %s1199_s4, 64 }
 0x133   : > { %p828_p8 = scmp.ne.s32.totalorder %s826_s27, %s827_s28  ;;  %p832_p11 = scmp.lt.s32.totalorder %s826_s27, %s1199_s4 }
 0x134   : > { %v340_v10 = vpop.permute.xlu0 %339  ;;  %p833_p12 = scmp.lt.s32.totalorder %s831_s21, %s827_s28 }
 0x135   : > { %342 = vst.msk [vmem:[%s298_s10] sm:$0xff] %vm308_vm0, %v340_v10  ;;  %p829_p9 = pnand %p828_p8, %p1040_p2 }
 0x136   : > { %p834_p13 = por %p833_p12, %p832_p11 }
 0x137   : > { %p830_p10 = pneg %p829_p9 }
 0x139   : > { %p835_p0 = pnand %p834_p13, %p830_p10 }
 0x13b   : > { %838 = shalt.err (!%p835_p0)
}
 0x13c   : > { %599 = dma.vmem_to_hbm [thread:$0]  (%p1040_p2), %s401_s12, 128, %s403_s16, %s1116_s6  }
 0x13d PF: > { %s1200_s7 = sld [smem:[#allocation15_spill]]  ;;  %p624_p5 = scmp.ge.s32.totalorder %s917_s25, 2 }
 0x13f   : > { %p612_p6 = pnand %p624_p5, %p1046_p4 }
 0x141   : > { %p613_p7 = pneg %p612_p6 }
 0x143   : > { %s414_s5 = sand.u32 1, %s1200_s7  }
 0x144   : > { %s415_s26 = scalar_lea.sflag [#allocation4], %s414_s5 }
 0x145   : > { %880 = dma.done.wait (%p613_p7), %s415_s26, 128  }
 0x146   : > { %882 = vsyncadd (%p613_p7), %s415_s26, 4294967168  ;;  %s1202_s18 = sadd.s32 4294967294, %s917_s25  }
 0x147   : > { %s424_s30 = sand.u32 1, %s1202_s18  }
 0x148   : > { %s425_s13 = scalar_lea.sflag [#allocation9], %s424_s30 }
 0x149   : > { %884 = dma.done.wait (%p613_p7), %s425_s13, 256  }
 0x14a   : > { %886 = vsyncadd (%p613_p7), %s425_s13, 4294967040  ;;  %s26_s25 = sadd.s32 1, %s917_s25   ;;  %s1203_s17 = sld [smem:[#allocation16_spill]] }
 0x14b   : > { %p23_p2 = scmp.ge.s32.totalorder %s26_s25, 10   ;;  %s1204_s6 = sld [smem:[#allocation17_spill]] }
 0x14c   : > { %s1205_s18 = smov %s893_s19  ;;  %s1206_s19 = smov %s897_s20 }
 0x14d   : > { %s1207_s20 = smov %s1053_s8  ;;  %s1208_s21 = smov %s909_s23 }
 0x14e   : > { %s1209_s22 = smov %s913_s24  ;;  %25 = sbr.rel (!%p23_p2) target bundleno = 14 (0xe), region = 113 }
 0x150   : > { %s1210_s23 = smov %s1203_s17 }
 0x151   : > { %s1211_s24 = smov %s1204_s6 }
 0x153   :  { %441 = vsyncpa [#allocation3], 1 }
 0x154   :  { %443 = vsyncpa [#allocation3 + $0x1], 1 }
 0x155   :  { %444 = vsyncpa [#allocation6], 1 }
 0x156   :  { %445 = vsyncpa [#allocation4], 1 }
 0x157   :  { %447 = vsyncpa [#allocation4 + $0x1], 1 }
 0x158   :  { %448 = vsyncpa [#allocation9], 1 }
 0x159   :  { %450 = vsyncpa [#allocation9 + $0x1], 1 }

</bundles_post_ra>
